<compile_context>
chip_gen: v5e
topology: v5e:2x2
jax: 0.10.0
libtpu: 0.0.40
codegen_flags: <defaults>
</compile_context>

<pallas_src>
import math

import jax
import jax.numpy as jnp
from jax.experimental import pallas as pl
from jax.experimental.pallas import tpu as pltpu


def _fused_gcn_kernel(x_hbm_ref, adj_ref, w_ref, b_ref, o_ref,
                      act_ref, h_ref, acc_ref, dma_sem):
    tm, tk = adj_ref.shape
    l = pl.program_id(0)              # layer index      (state-carrying -> "arbitrary")
    i = pl.program_id(1)              # output row tile of adj / y
    k = pl.program_id(2)              # reduction tile over adj columns == H rows
    nl = pl.num_programs(0)
    nk = pl.num_programs(2)

    # One-time prologue: DMA the (pre-padded, pre-cast) node features straight
    # from HBM into the resident activation scratch.  No VMEM input buffer for x.
    @pl.when((l == 0) & (i == 0) & (k == 0))
    def _():
        cp = pltpu.make_async_copy(x_hbm_ref, act_ref, dma_sem)
        cp.start()
        cp.wait()

    ks = pl.multiple_of(k * tk, tk)

    # Per layer: H = act @ W_l, hoisted out of the row-tile loop.  Computed
    # slice-by-slice on the first row tile so it overlaps the adj tile DMAs,
    # then reused by every subsequent row tile of this layer.
    @pl.when(i == 0)
    def _():
        h_ref[pl.ds(ks, tk), :] = jnp.dot(
            act_ref[pl.ds(ks, tk), :], w_ref[...],
            preferred_element_type=jnp.float32,
        ).astype(h_ref.dtype)

    # Aggregation: acc += adj[i, k] @ H[k]   (f32 accumulator in VMEM).
    @pl.when(k == 0)
    def _():
        acc_ref[...] = jnp.zeros_like(acc_ref)

    acc_ref[...] += jnp.dot(adj_ref[...], h_ref[pl.ds(ks, tk), :],
                            preferred_element_type=jnp.float32)

    # Finalize the row tile: bias add, then
    #   * only the LAST layer stores the (pre-ReLU) result to the output block
    #     -> no ReLU after the final conv, no output vst for earlier layers;
    #   * only NON-last layers store the post-ReLU value back into the resident
    #     activation scratch (the last layer's activation is never read again).
    @pl.when(k == nk - 1)
    def _():
        y = acc_ref[...] + b_ref[...]

        @pl.when(l == nl - 1)
        def _():
            o_ref[...] = y.astype(o_ref.dtype)

        @pl.when(l < nl - 1)
        def _():
            rs = pl.multiple_of(i * tm, tm)
            act_ref[pl.ds(rs, tm), :] = jnp.maximum(y, 0.0).astype(act_ref.dtype)


def _round_up(v: int, m: int) -> int:
    return (v + m - 1) // m * m


def _pad2(a, rows, cols, dtype):
    a = jnp.asarray(a, dtype)
    return jnp.pad(a, ((0, rows - a.shape[0]), (0, cols - a.shape[1])))


def _vmem_capacity_bytes() -> int:
    try:
        return int(pltpu.get_tpu_info().vmem_capacity_bytes)
    except Exception:
        return 64 << 20   # conservative fallback = v7x per-TC VMEM


def graph_encoder_forward(x, adj, weights, biases, *,
                          compute_dtype=jnp.bfloat16, tm=256, tk=256):
    """Fused multi-layer GCN encoder forward (single pallas_call)."""
    n, in_dim = x.shape
    out_dim = weights[-1].shape[1]
    num_layers = len(weights)
    out_dtype = x.dtype

    # Lane-dense padding: features to a multiple of 128, nodes to the tile size.
    # NOTE: heterogeneous layer dims all pad to max(in_dim, out_dim) -> a wide
    # hidden / narrow output layer pays MXU flops + act/H VMEM for the padding.
    f_pad = _round_up(max(in_dim, out_dim), 128)
    n_tile = math.lcm(tm, tk)         # tm == tk by default, so no inflation
    n_pad = _round_up(max(n, n_tile), n_tile)

    x_p = _pad2(x, n_pad, f_pad, compute_dtype)
    adj_p = _pad2(adj, n_pad, n_pad, compute_dtype)
    # All layer weights padded to a common [f_pad, f_pad]; zero rows/cols are
    # inert because the padded feature columns of the activation stay zero.
    w_p = jnp.stack([_pad2(w, f_pad, f_pad, compute_dtype) for w in weights])
    b_p = jnp.stack([_pad2(b, 1, f_pad, jnp.float32) for b in biases])

    grid = (num_layers, n_pad // tm, n_pad // tk)

    csz = jnp.dtype(compute_dtype).itemsize
    vmem_bytes = (
        2 * tm * tk * csz            # adj tiles (double buffered)
        + 2 * f_pad * f_pad * csz    # per-layer weight block
        + 2 * 8 * f_pad * 4          # per-layer bias block (sublane-padded)
        + 2 * tm * f_pad * csz       # output tiles
        + 2 * n_pad * f_pad * csz    # resident activation + H scratch
        + tm * f_pad * 4             # f32 row-tile accumulator
    )
    cap = _vmem_capacity_bytes()
    budget_cap = int(cap * 0.9)
    if vmem_bytes > budget_cap:
        raise ValueError(
            f"GraphEncoder kernel needs ~{vmem_bytes >> 20} MiB VMEM but only "
            f"{budget_cap >> 20} MiB is available; reduce tm/tk or shrink the graph.")
    vmem_limit = int(min(max(vmem_bytes + (8 << 20), 32 << 20), budget_cap))

    out = pl.pallas_call(
        _fused_gcn_kernel,
        out_shape=jax.ShapeDtypeStruct((n_pad, f_pad), compute_dtype),
        grid=grid,
        in_specs=[
            pl.BlockSpec(memory_space=pl.ANY),                               # x stays in HBM
            pl.BlockSpec((tm, tk), lambda l, i, k: (i, k)),                  # adj tile
            pl.BlockSpec((None, f_pad, f_pad), lambda l, i, k: (l, 0, 0)),   # W_l
            pl.BlockSpec((None, 1, f_pad), lambda l, i, k: (l, 0, 0)),       # b_l
        ],
        out_specs=pl.BlockSpec((tm, f_pad), lambda l, i, k: (i, 0)),
        scratch_shapes=[
            pltpu.VMEM((n_pad, f_pad), compute_dtype),   # resident activation
            pltpu.VMEM((n_pad, f_pad), compute_dtype),   # H = act @ W_l
            pltpu.VMEM((tm, f_pad), jnp.float32),        # row-tile accumulator
            pltpu.SemaphoreType.DMA(()),                 # x -> act prologue DMA
        ],
        compiler_params=pltpu.CompilerParams(
            dimension_semantics=("arbitrary", "arbitrary", "arbitrary"),
            vmem_limit_bytes=vmem_limit,
        ),
    )(x_p, adj_p, w_p, b_p)

    return out[:n, :out_dim].astype(out_dtype)


def graph_encoder_reference(x, adj, weights, biases):
    """Pure-JAX f32 reference for correctness checking."""
    num_layers = len(weights)
    for i in range(num_layers - 1):
        x = jnp.maximum(adj @ (x @ weights[i]) + biases[i], 0.0)
    x = adj @ (x @ weights[-1]) + biases[-1]
    return x


if __name__ == "__main__":
    # Small, deterministic setup: num_nodes=8, in_dim=32, out_dim=16, 2 layers.
    num_nodes, in_dim, out_dim, num_layers = 8, 32, 16, 2

    key = jax.random.PRNGKey(0)
    k_x, k_adj, k_w0, k_w1, k_b0, k_b1 = jax.random.split(key, 6)

    x = jax.random.normal(k_x, (num_nodes, in_dim), dtype=jnp.float32)

    # Dense adjacency with self-loops, row-normalized (typical GCN input).
    a = (jax.random.uniform(k_adj, (num_nodes, num_nodes)) > 0.5).astype(jnp.float32)
    a = jnp.maximum(a, a.T) + jnp.eye(num_nodes, dtype=jnp.float32)
    adj = a / jnp.sum(a, axis=1, keepdims=True)

    # GraphEncoder.__init__: (num_layers-1) convs in_dim->in_dim, last in_dim->out_dim.
    weights = [
        jax.random.normal(k_w0, (in_dim, in_dim), dtype=jnp.float32) * 0.1,
        jax.random.normal(k_w1, (in_dim, out_dim), dtype=jnp.float32) * 0.1,
    ]
    biases = [
        jax.random.normal(k_b0, (1, in_dim), dtype=jnp.float32) * 0.01,
        jax.random.normal(k_b1, (1, out_dim), dtype=jnp.float32) * 0.01,
    ]

    ref = graph_encoder_reference(x, adj, weights, biases)

    # bf16 operands (f32 accumulation) — the fast path on v6e/v7x.
    out_bf16 = jax.block_until_ready(
        graph_encoder_forward(x, adj, weights, biases, compute_dtype=jnp.bfloat16))
    # f32 operands — tight numerical check of the fused/tiled structure.
    out_f32 = jax.block_until_ready(
        graph_encoder_forward(x, adj, weights, biases, compute_dtype=jnp.float32))

    assert out_bf16.shape == (num_nodes, out_dim), out_bf16.shape
    assert out_f32.shape == (num_nodes, out_dim), out_f32.shape
    assert jnp.allclose(out_f32, ref, atol=1e-4, rtol=1e-4), "f32 mismatch vs reference"
    assert jnp.allclose(out_bf16, ref, atol=3e-2, rtol=3e-2), "bf16 mismatch vs reference"

    print("KERNEL_OK")
</pallas_src>

<mosaic_0001>
module attributes {stable_mosaic.version = 11 : i64} {
  func.func @_fused_gcn_kernel(%arg0: i32, %arg1: i32, %arg2: i32, %arg3: memref<256x128xbf16, #tpu.memory_space<any>>, %arg4: memref<256x256xbf16, #tpu.memory_space<vmem>>, %arg5: memref<1x128x128xbf16, #tpu.memory_space<vmem>>, %arg6: memref<1x1x128xf32, #tpu.memory_space<vmem>>, %arg7: memref<256x128xbf16, #tpu.memory_space<vmem>>, %arg8: memref<256x128xbf16, #tpu.memory_space<vmem>>, %arg9: memref<256x128xbf16, #tpu.memory_space<vmem>>, %arg10: memref<256x128xf32, #tpu.memory_space<vmem>>, %arg11: memref<!tpu.dma_semaphore, #tpu.memory_space<semaphore_mem>>) attributes {dimension_semantics = [#tpu.dimension_semantics<arbitrary>, #tpu.dimension_semantics<arbitrary>, #tpu.dimension_semantics<arbitrary>], iteration_bounds = array<i64: 2, 1, 1>, scalar_prefetch = 0 : i64, scratch_operands = 4 : i64, tpu.core_type = #tpu.core_type<tc>, window_params = [{}, {transform_indices = @transform_1, window_bounds = array<i64: 256, 256>}, {transform_indices = @transform_2, window_bounds = array<i64: 1, 128, 128>}, {transform_indices = @transform_3, window_bounds = array<i64: 1, 1, 128>}, {transform_indices = @transform_4, window_bounds = array<i64: 256, 128>}]} {
    %c0_i32 = arith.constant 0 : i32
    %0 = arith.cmpi eq, %arg0, %c0_i32 : i32
    %c0_i32_0 = arith.constant 0 : i32
    %1 = arith.cmpi eq, %arg1, %c0_i32_0 : i32
    %2 = arith.andi %0, %1 : i1
    %c0_i32_1 = arith.constant 0 : i32
    %3 = arith.cmpi eq, %arg2, %c0_i32_1 : i32
    %4 = arith.andi %2, %3 : i1
    %5 = arith.extui %4 : i1 to i32
    %c0_i32_2 = arith.constant 0 : i32
    %6 = arith.cmpi ne, %5, %c0_i32_2 : i32
    scf.if %6 {
      tpu.enqueue_dma source(%arg3 : memref<256x128xbf16, #tpu.memory_space<any>>) target(%arg8 : memref<256x128xbf16, #tpu.memory_space<vmem>>) target_semaphore(%arg11 : memref<!tpu.dma_semaphore, #tpu.memory_space<semaphore_mem>>)
      tpu.wait_dma2 semaphore(%arg11 : memref<!tpu.dma_semaphore, #tpu.memory_space<semaphore_mem>>) src(%arg3 : memref<256x128xbf16, #tpu.memory_space<any>>) dst(%arg8 : memref<256x128xbf16, #tpu.memory_space<vmem>>)
    } else {
    }
    %c256_i32 = arith.constant 256 : i32
    %7 = arith.muli %arg2, %c256_i32 : i32
    %8 = tpu.assume_multiple %7, 256 : i32
    %c0_i32_3 = arith.constant 0 : i32
    %9 = arith.cmpi eq, %arg1, %c0_i32_3 : i32
    %10 = arith.extui %9 : i1 to i32
    %c0_i32_4 = arith.constant 0 : i32
    %11 = arith.cmpi ne, %10, %c0_i32_4 : i32
    scf.if %11 {
      %25 = arith.index_cast %8 : i32 to index
      %c0_15 = arith.constant 0 : index
      %26 = vector.load %arg8[%25, %c0_15] : memref<256x128xbf16, #tpu.memory_space<vmem>>, vector<256x128xbf16>
      %c0_16 = arith.constant 0 : index
      %c0_17 = arith.constant 0 : index
      %c0_18 = arith.constant 0 : index
      %27 = vector.load %arg5[%c0_16, %c0_17, %c0_18] : memref<1x128x128xbf16, #tpu.memory_space<vmem>>, vector<1x128x128xbf16>
      %28 = vector.shape_cast %27 : vector<1x128x128xbf16> to vector<128x128xbf16>
      %cst_19 = arith.constant dense<0.000000e+00> : vector<256x128xf32>
      %29 = tpu.matmul %26, %28, %cst_19 {dimension_numbers = #tpu.dot_dimension_numbers<[1], [0], [0], [1], [0, 0, 1, 1], [], []>} : vector<256x128xbf16>, vector<128x128xbf16>, vector<256x128xf32> -> vector<256x128xf32>
      %30 = arith.truncf %29 : vector<256x128xf32> to vector<256x128xbf16>
      %31 = arith.index_cast %8 : i32 to index
      %c0_20 = arith.constant 0 : index
      %32 = vector.load %arg9[%31, %c0_20] : memref<256x128xbf16, #tpu.memory_space<vmem>>, vector<256x128xbf16>
      tpu.vector_store %arg9[%31, %c0_20], %30 {strides = array<i32>} : memref<256x128xbf16, #tpu.memory_space<vmem>>, vector<256x128xbf16>,
    } else {
    }
    %c0_i32_5 = arith.constant 0 : i32
    %12 = arith.cmpi eq, %arg2, %c0_i32_5 : i32
    %13 = arith.extui %12 : i1 to i32
    %c0_i32_6 = arith.constant 0 : i32
    %14 = arith.cmpi ne, %13, %c0_i32_6 : i32
    scf.if %14 {
      %cst_15 = arith.constant 0.000000e+00 : f32
      %25 = vector.broadcast %cst_15 : f32 to vector<256x128xf32>
      %c0_16 = arith.constant 0 : index
      %c0_17 = arith.constant 0 : index
      %26 = vector.load %arg10[%c0_16, %c0_17] : memref<256x128xf32, #tpu.memory_space<vmem>>, vector<256x128xf32>
      tpu.vector_store %arg10[%c0_16, %c0_17], %25 {strides = array<i32>} : memref<256x128xf32, #tpu.memory_space<vmem>>, vector<256x128xf32>,
    } else {
    }
    %c0 = arith.constant 0 : index
    %c0_7 = arith.constant 0 : index
    %15 = vector.load %arg10[%c0, %c0_7] : memref<256x128xf32, #tpu.memory_space<vmem>>, vector<256x128xf32>
    %c0_8 = arith.constant 0 : index
    %c0_9 = arith.constant 0 : index
    %16 = vector.load %arg4[%c0_8, %c0_9] : memref<256x256xbf16, #tpu.memory_space<vmem>>, vector<256x256xbf16>
    %17 = arith.index_cast %8 : i32 to index
    %c0_10 = arith.constant 0 : index
    %18 = vector.load %arg9[%17, %c0_10] : memref<256x128xbf16, #tpu.memory_space<vmem>>, vector<256x128xbf16>
    %cst = arith.constant dense<0.000000e+00> : vector<256x128xf32>
    %19 = tpu.matmul %16, %18, %cst {dimension_numbers = #tpu.dot_dimension_numbers<[1], [0], [0], [1], [0, 0, 1, 1], [], []>} : vector<256x256xbf16>, vector<256x128xbf16>, vector<256x128xf32> -> vector<256x128xf32>
    %20 = arith.addf %15, %19 : vector<256x128xf32>
    %c0_11 = arith.constant 0 : index
    %c0_12 = arith.constant 0 : index
    %21 = vector.load %arg10[%c0_11, %c0_12] : memref<256x128xf32, #tpu.memory_space<vmem>>, vector<256x128xf32>
    tpu.vector_store %arg10[%c0_11, %c0_12], %20 {strides = array<i32>} : memref<256x128xf32, #tpu.memory_space<vmem>>, vector<256x128xf32>,
    %c0_i32_13 = arith.constant 0 : i32
    %22 = arith.cmpi eq, %arg2, %c0_i32_13 : i32
    %23 = arith.extui %22 : i1 to i32
    %c0_i32_14 = arith.constant 0 : i32
    %24 = arith.cmpi ne, %23, %c0_i32_14 : i32
    scf.if %24 {
      %c0_15 = arith.constant 0 : index
      %c0_16 = arith.constant 0 : index
      %25 = vector.load %arg10[%c0_15, %c0_16] : memref<256x128xf32, #tpu.memory_space<vmem>>, vector<256x128xf32>
      %c0_17 = arith.constant 0 : index
      %c0_18 = arith.constant 0 : index
      %c0_19 = arith.constant 0 : index
      %26 = vector.load %arg6[%c0_17, %c0_18, %c0_19] : memref<1x1x128xf32, #tpu.memory_space<vmem>>, vector<1x1x128xf32>
      %27 = vector.shape_cast %26 : vector<1x1x128xf32> to vector<1x128xf32>
      %28 = vector.broadcast %27 : vector<1x128xf32> to vector<256x128xf32>
      %29 = arith.addf %25, %28 : vector<256x128xf32>
      %c1_i32 = arith.constant 1 : i32
      %30 = arith.cmpi eq, %arg0, %c1_i32 : i32
      %31 = arith.extui %30 : i1 to i32
      %c0_i32_20 = arith.constant 0 : i32
      %32 = arith.cmpi ne, %31, %c0_i32_20 : i32
      scf.if %32 {
        %36 = arith.truncf %29 : vector<256x128xf32> to vector<256x128xbf16>
        %c0_23 = arith.constant 0 : index
        %c0_24 = arith.constant 0 : index
        %37 = vector.load %arg7[%c0_23, %c0_24] : memref<256x128xbf16, #tpu.memory_space<vmem>>, vector<256x128xbf16>
        tpu.vector_store %arg7[%c0_23, %c0_24], %36 {strides = array<i32>} : memref<256x128xbf16, #tpu.memory_space<vmem>>, vector<256x128xbf16>,
      } else {
      }
      %c1_i32_21 = arith.constant 1 : i32
      %33 = arith.cmpi slt, %arg0, %c1_i32_21 : i32
      %34 = arith.extui %33 : i1 to i32
      %c0_i32_22 = arith.constant 0 : i32
      %35 = arith.cmpi ne, %34, %c0_i32_22 : i32
      scf.if %35 {
        %c256_i32_23 = arith.constant 256 : i32
        %36 = arith.muli %arg1, %c256_i32_23 : i32
        %37 = tpu.assume_multiple %36, 256 : i32
        %cst_24 = arith.constant 0.000000e+00 : f32
        %38 = vector.broadcast %cst_24 : f32 to vector<256x128xf32>
        %39 = arith.maximumf %29, %38 : vector<256x128xf32>
        %40 = arith.truncf %39 : vector<256x128xf32> to vector<256x128xbf16>
        %41 = arith.index_cast %37 : i32 to index
        %c0_25 = arith.constant 0 : index
        %42 = vector.load %arg8[%41, %c0_25] : memref<256x128xbf16, #tpu.memory_space<vmem>>, vector<256x128xbf16>
        tpu.vector_store %arg8[%41, %c0_25], %40 {strides = array<i32>} : memref<256x128xbf16, #tpu.memory_space<vmem>>, vector<256x128xbf16>,
      } else {
      }
    } else {
    }
    return
  }
  func.func @transform_1(%arg0: i32, %arg1: i32, %arg2: i32) -> (i32, i32) {
    %c0_i32 = arith.constant 0 : i32
    return %arg1, %arg2 : i32, i32
  }
  func.func @transform_2(%arg0: i32, %arg1: i32, %arg2: i32) -> (i32, i32, i32) {
    %c0_i32 = arith.constant 0 : i32
    %c0_i32_0 = arith.constant 0 : i32
    %c0_i32_1 = arith.constant 0 : i32
    return %arg0, %c0_i32, %c0_i32_0 : i32, i32, i32
  }
  func.func @transform_3(%arg0: i32, %arg1: i32, %arg2: i32) -> (i32, i32, i32) {
    %c0_i32 = arith.constant 0 : i32
    %c0_i32_0 = arith.constant 0 : i32
    %c0_i32_1 = arith.constant 0 : i32
    return %arg0, %c0_i32, %c0_i32_0 : i32, i32, i32
  }
  func.func @transform_4(%arg0: i32, %arg1: i32, %arg2: i32) -> (i32, i32) {
    %c0_i32 = arith.constant 0 : i32
    %c0_i32_0 = arith.constant 0 : i32
    return %arg1, %c0_i32 : i32, i32
  }
}

</mosaic_0001>

<bundles_post_ra>
// kernel: tpu_custom_call.1
= control target key start
LH: loop header
LB: loop body
LE: loop exit
PB: predicated region body
PF: predicated region fallthrough
CT: control target
= control target key end

     0   :  { %9 = vsyncpa [#allocation7], 0  ;;  %s2936_s0 = inlined_call_operand.hbm [shape: bf16[256,128], index: 0, kind: input, shape index: {}]   ;;  %s2937_s1 = inlined_call_operand.hbm [shape: bf16[256,256], index: 1, kind: input, shape index: {}]   ;;  %s2938_s2 = inlined_call_operand.hbm [shape: bf16[2,128,128], index: 2, kind: input, shape index: {}]   ;;  %s2939_s3 = inlined_call_operand.vmem [shape: f32[2,1,128], index: 3, kind: input, shape index: {}]   ;;  %s2940_s4 = inlined_call_operand.hbm [shape: bf16[256,128], index: 4, kind: output, shape index: {}]  }
   0x1   :  { %10 = vsyncpa [#allocation10], 0 }
   0x2   :  { %12 = vsyncpa [#allocation10 + $0x1], 0 }
   0x3   :  { %13 = vsyncpa [#allocation8], 0  ;;  %s2615_s15 = smov 0   ;;  %s2617_s16 = smov 0  }
   0x4   :  { %s2619_s17 = smov 0   ;;  %s2621_s18 = smov 0  }
   0x5   :  { %s2623_s19 = smov 0   ;;  %s2625_s20 = smov 0  }
   0x6 LB: > { %s1627_s21 = sadd.s32 4294967295, %s2579_s20   ;;  %p86_p0 = scmp.ne.s32.totalorder %s2563_s16, %s2559_s15  ;;  %s2579_s20 = sphi %s2625_s20, %s19_s20   ;;  %s2575_s19 = sphi %s2623_s19, %s2949_s19   ;;  %s2571_s18 = sphi %s2621_s18, %s2948_s18   ;;  %s2567_s17 = sphi %s2619_s17, %s2947_s17   ;;  %s2563_s16 = sphi %s2617_s16, %s2946_s16   ;;  %s2559_s15 = sphi %s2615_s15, %s2945_s15  }
   0x7   : > { %p2647_p1 = scmp.eq.s32.totalorder %s1627_s21, 0  ;;  %p1628_p2 = scmp.ge.s32.totalorder %s2579_s20, 1 }
   0x8   : > { %p149_p3 = scmp.lt.s32.totalorder %s2579_s20, 3  ;;  %s166_s26 = sshll.u32 %s2937_s1, 4  ;;  %s167_s26 = int_to_ptr.hbm [resolvable:$true] %s166_s26 }
   0x9   : > { %p2655_p4 = por %p2647_p1, %p86_p0  ;;  %s2581_s28 = smov [#allocation6]  }
   0xa   : > { %p2662_p5 = pnand %p1628_p2, %p149_p3  ;;  %s168_s29 = sshll.u32 %s2581_s28, 4  ;;  %s169_s29 = int_to_ptr.vmem [resolvable:$true] %s168_s29 }
   0xb   : > { %s2582_s30 = smov 128   ;;  %s2583_s5 = smov 8  }
   0xc   : > { %p2330_p6 = pneg %p2662_p5  ;;  %s38_s6 = sadd.s32 1, %s2575_s19 }
   0xd   : > { %p40_p8 = scmp.ge.s32.totalorder %s38_s6, 2  ;;  %s73_s7 = sadd.s32 1, %s2567_s17 }
   0xe   : > { %p2331_p7 = pnand %p2330_p6, %p2647_p1  ;;  %p80_p9 = scmp.ne.s32.totalorder %s2567_s17, %s2563_s16 }
   0xf   : > { %p81_p10 = scmp.eq.s32.totalorder %s2579_s20, 0  ;;  %s2951_s6 = smov (%p40_p8, %s38_s6), 0 }
  0x10   : > { %2333 = dma.hbm_to_vmem [thread:$0]  (!%p2331_p7), %s167_s26, 4096, %s169_s29, [#allocation7], %s2582_s30, %s2582_s30, %s2583_s5  }
  0x11   : > { %p2677_p11 = por %p81_p10, %p80_p9  ;;  %p2339_p12 = scmp.lt.s32.totalorder %s2579_s20, 2 }
  0x12   : > { %s70_s9 = ssub.s32 %s2575_s19, %s2951_s6  ;;  %s182_s10 = sand.u32 1, %s2567_s17  }
  0x13   : > { %p71_p13 = scmp.eq.s32.totalorder %s70_s9, 0  ;;  %s1631_s11 = sshll.u32 %s182_s10, 6 }
  0x14   : > { %s1934_s12 = sshll.u32 %s2575_s19, 6  ;;  %s186_s26 = scalar_lea.vmem [#allocation9], %s1631_s11 }
  0x15   : > { %s2687_s13 = scalar_select %p71_p13, %s2567_s17, %s73_s7  }
  0x16   : > { %s191_s24 = scalar_lea.hbm %s2938_s2, %s1934_s12  ;;  %s194_s28 = sshll.u32 %s186_s26, 4  ;;  %s195_s28 = int_to_ptr.vmem [resolvable:$true] %s194_s28 }
  0x17   : > { %s192_s25 = sshll.u32 %s191_s24, 4  ;;  %p2335_p0 = pnand %p2339_p12, %p2677_p11  ;;  %s193_s25 = int_to_ptr.hbm [resolvable:$true] %s192_s25 }
  0x18   : > { %s183_s29 = scalar_lea.sflag [#allocation10], %s182_s10  ;;  %s2584_s30 = smov 64  }
  0x19   : > { %s2585_s5 = smov 4   ;;  %212 = sbr.rel (%p2662_p5) target bundleno = 779 (0x30b), region = 32 }
  0x1a   : > { %2337 = dma.hbm_to_vmem [thread:$0]  (!%p2335_p0), %s193_s25, 1024, %s195_s28, %s183_s29, %s2584_s30, %s2584_s30, %s2585_s5  }
  0x1e   : > { %2542 = dma.done.wait (%p2647_p1), [#allocation7], 4096  }
  0x1f   : > { %2544 = vsyncadd (%p2647_p1), [#allocation7], 4294963200  ;;  %s219_s7 = sand.u32 1, %s2563_s16  }
  0x20   : > { %s1636_s9 = sshll.u32 %s219_s7, 6  ;;  %s220_s8 = scalar_lea.sflag [#allocation10], %s219_s7 }
  0x21   : > { %s2703_s11 = scalar_lea.vmem [#allocation9], %s1636_s9 }
  0x22   : > { %2546 = dma.done.wait (%p2655_p4), %s220_s8, 1024  }
  0x23   : > { %2548 = vsyncadd (%p2655_p4), %s220_s8, 4294966272  ;;  %p247_p2 = scmp.lt.s32.totalorder %s2571_s18, 1  ;;  %p251_p3 = scmp.eq.s32.totalorder %s2571_s18, 0 }
  0x24   : > { %s267_s10 = sshll.u32 %s2936_s0, 4  ;;  %s2586_s14 = smov [#allocation2]   ;;  %s268_s10 = int_to_ptr.hbm [resolvable:$true] %s267_s10 }
  0x25   : > { %s2715_s12 = scalar_select %p247_p2, %s2571_s18, 1 }
  0x26   : > { %s269_s15 = sshll.u32 %s2586_s14, 4  ;;  %s270_s15 = int_to_ptr.vmem [resolvable:$true] %s269_s15 }
  0x27   : > { %s249_s23 = scalar_lea.vmem %s2939_s3, %s2715_s12 }
  0x28   : > { %2324 = dma.hbm_to_vmem [thread:$0]  (%p251_p3), %s268_s10, 2048, %s270_s15, [#allocation5] }
  0x29   : > { %2550 = dma.done.wait (%p251_p3), [#allocation5], 2048 }
  0x2a   : > { %2552 = vsyncadd (%p251_p3), [#allocation5], 4294965248  ;;  %v1960_v0 = vld [vmem:[%s2703_s11 + $0x38] sm:$0xff]  ;;  %v1959_v1 = vld [vmem:[%s2703_s11 + $0x30] sm:$0xff]  ;;  %p1927_p1 = scmp.ne.s32.totalorder %s2571_s18, 1 }
  0x2b   : > { %477 = vmatpush.bf16.msra.mxu0 %v1960_v0  ;;  %2294 = vmatpush.bf16.msra.mxu3 %v1960_v0  ;;  %v1958_v2 = vld [vmem:[%s2703_s11 + $0x28] sm:$0xff]  ;;  %v1957_v3 = vld [vmem:[%s2703_s11 + $0x20] sm:$0xff]  ;;  %v1956_v4 = vld [vmem:[%s2703_s11 + $0x18] sm:$0xff] }
  0x2c   : > { %v1955_v5 = vld [vmem:[%s2703_s11 + $0x10] sm:$0xff]  ;;  %v1954_v6 = vld [vmem:[%s2703_s11 + $0x8] sm:$0xff]  ;;  %v1953_v7 = vld [vmem:[%s2703_s11] sm:$0xff] }
  0x2d   : > { %v1937_v8 = vld [vmem:[#allocation2] sm:$0xff]  ;;  %v1938_v10 = vld [vmem:[#allocation2 + $0x8] sm:$0xff]  ;;  %v1939_v12 = vld [vmem:[#allocation2 + $0x10] sm:$0xff] }
  0x2e   : > { %v1949_v9 = vld [vmem:[#allocation2 + $0x60] sm:$0xff]  ;;  %v1950_v11 = vld [vmem:[#allocation2 + $0x68] sm:$0xff]  ;;  %v1951_v13 = vld [vmem:[#allocation2 + $0x70] sm:$0xff] }
  0x2f   : > { %478 = vmatpush.bf16.msra.mxu0 %v1959_v1  ;;  %2295 = vmatpush.bf16.msra.mxu3 %v1959_v1  ;;  %v1940_v14 = vld [vmem:[#allocation2 + $0x18] sm:$0xff]  ;;  %v1941_v16 = vld [vmem:[#allocation2 + $0x20] sm:$0xff]  ;;  %v1942_v17 = vld [vmem:[#allocation2 + $0x28] sm:$0xff] }
  0x30   : > { %v1952_v15 = vld [vmem:[#allocation2 + $0x78] sm:$0xff]  ;;  %v1943_v18 = vld [vmem:[#allocation2 + $0x30] sm:$0xff]  ;;  %v1945_v20 = vld [vmem:[#allocation2 + $0x40] sm:$0xff] }
  0x31   : > { %v1944_v19 = vld [vmem:[#allocation2 + $0x38] sm:$0xff]  ;;  %v1946_v25 = vld [vmem:[#allocation2 + $0x48] sm:$0xff]  ;;  %v1947_v32 = vld [vmem:[#allocation2 + $0x50] sm:$0xff] }
  0x32   : > { %v1948_v39 = vld [vmem:[#allocation2 + $0x58] sm:$0xff] }
  0x33   : > { %479 = vmatpush.bf16.msra.mxu0 %v1958_v2  ;;  %2296 = vmatpush.bf16.msra.mxu3 %v1958_v2 }
  0x37   : > { %480 = vmatpush.bf16.msra.mxu0 %v1957_v3  ;;  %2297 = vmatpush.bf16.msra.mxu3 %v1957_v3 }
  0x3b   : > { %481 = vmatpush.bf16.msra.mxu0 %v1956_v4  ;;  %2298 = vmatpush.bf16.msra.mxu3 %v1956_v4 }
  0x3f   : > { %482 = vmatpush.bf16.msra.mxu0 %v1955_v5  ;;  %2299 = vmatpush.bf16.msra.mxu3 %v1955_v5 }
  0x43   : > { %483 = vmatpush.bf16.msra.mxu0 %v1954_v6  ;;  %2300 = vmatpush.bf16.msra.mxu3 %v1954_v6 }
  0x47   : > { %484 = vmatpush.bf16.msra.mxu0 %v1953_v7  ;;  %2301 = vmatpush.bf16.msra.mxu3 %v1953_v7 }
  0x4a   : > { %485 = vmatmul.bf16.vlgmr.msra.gmra.mxu0 %v1937_v8  ;;  %545 = vmatmul.bf16.vlgmr.msra.gmra.mxu3 %v1949_v9 }
  0x5a   : > { %490 = vmatmul.bf16.gmra.mxu0 %v1938_v10  ;;  %550 = vmatmul.bf16.gmra.mxu3 %v1950_v11 }
  0x6a   : > { %495 = vmatmul.bf16.gmra.mxu0 %v1939_v12  ;;  %555 = vmatmul.bf16.gmra.mxu3 %v1951_v13 }
  0x7a   : > { %500 = vmatmul.bf16.gmra.mxu0 %v1940_v14  ;;  %560 = vmatmul.bf16.gmra.mxu3 %v1952_v15 }
  0x8a   : > { %505 = vmatmul.bf16.gmra.mxu0 %v1941_v16  ;;  %v1833_v16 = vld [vmem:[#allocation6 + $0xc0] sm:$0xf] }
  0x9a   : > { %510 = vmatmul.bf16.gmra.mxu0 %v1942_v17  ;;  %v1986_v17 = vld [vmem:[#allocation6 + $0xc4] sm:$0xf0] }
  0xaa   : > { %515 = vmatmul.bf16.gmra.mxu0 %v1943_v18 }
  0xba   : > { %520 = vmatmul.bf16.gmra.mxu0 %v1944_v19  ;;  %v1834_v19 = vor.u32 %v1986_v17, %v1833_v16  ;;  %v1991_v17 = vld [vmem:[#allocation6 + $0xf4] sm:$0xf] }
  0xc7   : > { %v486_v21 = vpop.f32.mrf.mxu0 }
  0xca   : > { %525 = vmatmul.bf16.gmra.mxu0 %v1945_v20  ;;  %v1737_v20 = vld [vmem:[#allocation6] sm:$0xf] }
  0xcd   : > { %v546_v24 = vpop.f32.mrf.mxu3 }
  0xcf   : > { %v488_v22 = vpop.f32.mrf.mxu0 }
  0xd0   : > { %v2012_v23 = vpack.c.bf16 %v488_v22, %v486_v21  ;;  %v1962_v21 = vld [vmem:[#allocation6 + $0x4] sm:$0xf0] }
  0xd1   : > { %v1738_v22 = vor.u32 %v1962_v21, %v1737_v20  ;;  %v1793_v20 = vld [vmem:[#allocation6 + $0x70] sm:$0xf]  ;;  %v1976_v21 = vld [vmem:[#allocation6 + $0x74] sm:$0xf0] }
  0xd2   : > { %2013 = vst [vmem:[#allocation3 + $0x30] sm:$0xff] %v2012_v23  }
  0xd5   : > { %v548_v27 = vpop.f32.mrf.mxu3 }
  0xd6   : > { %v2072_v28 = vpack.c.bf16 %v548_v27, %v546_v24  ;;  %v1841_v24 = vld [vmem:[#allocation6 + $0xd0] sm:$0xf] }
  0xd7   : > { %v491_v26 = vpop.f32.mrf.mxu0 }
  0xd8   : > { %2260 = vst [vmem:[#allocation3 + $0x60] sm:$0xff] %v2072_v28  }
  0xd9   : > { %v1993_v13 = vld [vmem:[#allocation3 + $0x30] sm:$0xff] }
  0xda   : > { %530 = vmatmul.bf16.gmra.mxu0 %v1946_v25  ;;  %v1988_v25 = vld [vmem:[#allocation6 + $0xd4] sm:$0xf0] }
  0xdd   : > { %v551_v31 = vpop.f32.mrf.mxu3 }
  0xdf   : > { %v493_v29 = vpop.f32.mrf.mxu0  ;;  %v2005_v57 = vld [vmem:[#allocation3 + $0x60] sm:$0xff] }
  0xe0   : > { %v2017_v30 = vpack.c.bf16 %v493_v29, %v491_v26  ;;  %v1842_v26 = vor.u32 %v1988_v25, %v1841_v24  ;;  %v1745_v29 = vld [vmem:[#allocation6 + $0x10] sm:$0xf]  ;;  %v1794_v24 = vor.u32 %v1976_v21, %v1793_v20 }
  0xe2   : > { %2249 = vst [vmem:[#allocation3] sm:$0xff] %v2017_v30   ;;  %v1964_v30 = vld [vmem:[#allocation6 + $0x14] sm:$0xf0] }
  0xe5   : > { %v553_v34 = vpop.f32.mrf.mxu3 }
  0xe6   : > { %v2077_v35 = vpack.c.bf16 %v553_v34, %v551_v31  ;;  %v1746_v31 = vor.u32 %v1964_v30, %v1745_v29  ;;  %v1990_v34 = vld [vmem:[#allocation6 + $0xe4] sm:$0xf0]  ;;  %v1787_v29 = vld [vmem:[#allocation6 + $0x68] sm:$0xf0] }
  0xe7   : > { %v496_v33 = vpop.f32.mrf.mxu0 }
  0xe8   : > { %2261 = vst [vmem:[#allocation3 + $0x70] sm:$0xff] %v2077_v35  }
  0xe9   : > { %v1994_v12 = vld [vmem:[#allocation3] sm:$0xff] }
  0xea   : > { %535 = vmatmul.bf16.gmra.mxu0 %v1947_v32 }
  0xed   : > { %v556_v38 = vpop.f32.mrf.mxu3 }
  0xef   : > { %v498_v36 = vpop.f32.mrf.mxu0  ;;  %v2006_v54 = vld [vmem:[#allocation3 + $0x70] sm:$0xff] }
  0xf0   : > { %v2022_v37 = vpack.c.bf16 %v498_v36, %v496_v33  ;;  %v1849_v33 = vld [vmem:[#allocation6 + $0xe0] sm:$0xf] }
  0xf1   : > { %v1850_v36 = vor.u32 %v1990_v34, %v1849_v33 }
  0xf2   : > { %2250 = vst [vmem:[#allocation3 + $0x58] sm:$0xff] %v2022_v37  }
  0xf5   : > { %v558_v41 = vpop.f32.mrf.mxu3 }
  0xf6   : > { %v2082_v42 = vpack.c.bf16 %v558_v41, %v556_v38  ;;  %v1753_v38 = vld [vmem:[#allocation6 + $0x20] sm:$0xf]  ;;  %v1739_v41 = vld [vmem:[#allocation6 + $0x8] sm:$0xf0] }
  0xf7   : > { %v501_v40 = vpop.f32.mrf.mxu0 }
  0xf8   : > { %2262 = vst [vmem:[#allocation3 + $0x78] sm:$0xff] %v2082_v42  }
  0xf9   : > { %v1995_v9 = vld [vmem:[#allocation3 + $0x58] sm:$0xff] }
  0xfa   : > { %540 = vmatmul.bf16.gmra.mxu0 %v1948_v39  ;;  %v1966_v39 = vld [vmem:[#allocation6 + $0x24] sm:$0xf0] }
  0xfb   : > { %v1754_v42 = vor.u32 %v1966_v39, %v1753_v38 }
  0xfd   : > { %v561_v45 = vpop.f32.mrf.mxu3 }
  0xff   : > { %v503_v43 = vpop.f32.mrf.mxu0  ;;  %v2007_v53 = vld [vmem:[#allocation3 + $0x78] sm:$0xff] }
 0x100   : > { %v2027_v44 = vpack.c.bf16 %v503_v43, %v501_v40  ;;  %v1961_v40 = vld [vmem:[#allocation6 + $0x4] sm:$0xf] }
 0x102   : > { %2251 = vst [vmem:[#allocation3 + $0x18] sm:$0xff] %v2027_v44   ;;  %v1742_v44 = vor.u32 %v1961_v40, %v1739_v41  ;;  %v1809_v40 = vld [vmem:[#allocation6 + $0x90] sm:$0xf]  ;;  %v1980_v41 = vld [vmem:[#allocation6 + $0x94] sm:$0xf0] }
 0x105   : > { %v563_v47 = vpop.f32.mrf.mxu3 }
 0x106   : > { %v2087_v48 = vpack.c.bf16 %v563_v47, %v561_v45  ;;  %v1857_v45 = vld [vmem:[#allocation6 + $0xf0] sm:$0xf] }
 0x107   : > { %v506_v46 = vpop.f32.mrf.mxu0 }
 0x108   : > { %2263 = vst [vmem:[#allocation3 + $0x28] sm:$0xff] %v2087_v48   ;;  %v1761_v48 = vld [vmem:[#allocation6 + $0x30] sm:$0xf] }
 0x109   : > { %v1996_v8 = vld [vmem:[#allocation3 + $0x18] sm:$0xff] }
 0x10f   : > { %v508_v49 = vpop.f32.mrf.mxu0  ;;  %v2008_v51 = vld [vmem:[#allocation3 + $0x28] sm:$0xff] }
 0x110   : > { %v2032_v50 = vpack.c.bf16 %v508_v49, %v506_v46  ;;  %1112 = vmatpush.bf16.msra.mxu2 %v2008_v51  ;;  %v1992_v46 = vld [vmem:[#allocation6 + $0xf4] sm:$0xf0] }
 0x111   : > { %v1858_v47 = vor.u32 %v1992_v46, %v1857_v45  ;;  %v1968_v49 = vld [vmem:[#allocation6 + $0x34] sm:$0xf0]  ;;  %v1977_v46 = vld [vmem:[#allocation6 + $0x84] sm:$0xf] }
 0x112   : > { %2252 = vst [vmem:[#allocation3 + $0x50] sm:$0xff] %v2032_v50   ;;  %v1963_v50 = vld [vmem:[#allocation6 + $0x14] sm:$0xf] }
 0x114   : > { %1113 = vmatpush.bf16.msra.mxu2 %v2007_v53 }
 0x117   : > { %v511_v52 = vpop.f32.mrf.mxu0 }
 0x118   : > { %1114 = vmatpush.bf16.msra.mxu2 %v2006_v54 }
 0x119   : > { %v1997_v6 = vld [vmem:[#allocation3 + $0x50] sm:$0xff] }
 0x11c   : > { %1115 = vmatpush.bf16.msra.mxu2 %v2005_v57 }
 0x11f   : > { %v513_v55 = vpop.f32.mrf.mxu0 }
 0x120   : > { %v2037_v56 = vpack.c.bf16 %v513_v55, %v511_v52  ;;  %v1762_v52 = vor.u32 %v1968_v49, %v1761_v48  ;;  %v1835_v55 = vld [vmem:[#allocation6 + $0xc8] sm:$0xf0]  ;;  %v1817_v49 = vld [vmem:[#allocation6 + $0xa0] sm:$0xf] }
 0x122   : > { %2253 = vst [vmem:[#allocation3 + $0x68] sm:$0xff] %v2037_v56  }
 0x127   : > { %v516_v58 = vpop.f32.mrf.mxu0 }
 0x129   : > { %v1998_v5 = vld [vmem:[#allocation3 + $0x68] sm:$0xff] }
 0x12f   : > { %v518_v59 = vpop.f32.mrf.mxu0 }
 0x130   : > { %v2042_v60 = vpack.c.bf16 %v518_v59, %v516_v58  ;;  %v1970_v58 = vld [vmem:[#allocation6 + $0x44] sm:$0xf0]  ;;  %v1965_v59 = vld [vmem:[#allocation6 + $0x24] sm:$0xf] }
 0x132   : > { %2254 = vst [vmem:[#allocation3 + $0x8] sm:$0xff] %v2042_v60   ;;  %v1755_v60 = vld [vmem:[#allocation6 + $0x28] sm:$0xf0] }
 0x137   : > { %v521_v61 = vpop.f32.mrf.mxu0 }
 0x139   : > { %v1999_v2 = vld [vmem:[#allocation3 + $0x8] sm:$0xff] }
 0x13f   : > { %v523_v62 = vpop.f32.mrf.mxu0 }
 0x140   : > { %v2047_v63 = vpack.c.bf16 %v523_v62, %v521_v61  ;;  %v1758_v62 = vor.u32 %v1965_v59, %v1755_v60  ;;  %v1979_v60 = vld [vmem:[#allocation6 + $0x94] sm:$0xf] }
 0x142   : > { %2255 = vst [vmem:[#allocation3 + $0x48] sm:$0xff] %v2047_v63   ;;  %v1987_v63 = vld [vmem:[#allocation6 + $0xd4] sm:$0xf] }
 0x147   : > { %v526_v0 = vpop.f32.mrf.mxu0 }
 0x149   : > { %v2000_v1 = vld [vmem:[#allocation3 + $0x48] sm:$0xff] }
 0x14a   : > { %1023 = vmatpush.bf16.msra.mxu1 %v2000_v1  ;;  %2302 = vmatpush.bf16.msrb.mxu3 %v2000_v1 }
 0x14e   : > { %1024 = vmatpush.bf16.msra.mxu1 %v1999_v2  ;;  %2303 = vmatpush.bf16.msrb.mxu3 %v1999_v2  ;;  %v1777_v2 = vld [vmem:[#allocation6 + $0x50] sm:$0xf] }
 0x14f   : > { %v528_v3 = vpop.f32.mrf.mxu0 }
 0x150   : > { %v2052_v4 = vpack.c.bf16 %v528_v3, %v526_v0  ;;  %v1843_v0 = vld [vmem:[#allocation6 + $0xd8] sm:$0xf0]  ;;  %v1972_v3 = vld [vmem:[#allocation6 + $0x54] sm:$0xf0] }
 0x151   : > { %v1846_v1 = vor.u32 %v1987_v63, %v1843_v0  ;;  %v1825_v63 = vld [vmem:[#allocation6 + $0xb0] sm:$0xf]  ;;  %v1984_v0 = vld [vmem:[#allocation6 + $0xb4] sm:$0xf0] }
 0x152   : > { %2256 = vst [vmem:[#allocation3 + $0x40] sm:$0xff] %v2052_v4   ;;  %1025 = vmatpush.bf16.msra.mxu1 %v1998_v5  ;;  %2304 = vmatpush.bf16.msrb.mxu3 %v1998_v5  ;;  %v1967_v4 = vld [vmem:[#allocation6 + $0x34] sm:$0xf]  ;;  %v1763_v5 = vld [vmem:[#allocation6 + $0x38] sm:$0xf0] }
 0x156   : > { %1026 = vmatpush.bf16.msra.mxu1 %v1997_v6  ;;  %2305 = vmatpush.bf16.msrb.mxu3 %v1997_v6  ;;  %v1778_v6 = vor.u32 %v1972_v3, %v1777_v2 }
 0x157   : > { %v531_v7 = vpop.f32.mrf.mxu0 }
 0x159   : > { %v2001_v43 = vld [vmem:[#allocation3 + $0x40] sm:$0xff] }
 0x15a   : > { %1027 = vmatpush.bf16.msra.mxu1 %v1996_v8  ;;  %2306 = vmatpush.bf16.msrb.mxu3 %v1996_v8  ;;  %v1989_v8 = vld [vmem:[#allocation6 + $0xe4] sm:$0xf] }
 0x15e   : > { %1028 = vmatpush.bf16.msra.mxu1 %v1995_v9  ;;  %2307 = vmatpush.bf16.msrb.mxu3 %v1995_v9  ;;  %v1851_v9 = vld [vmem:[#allocation6 + $0xe8] sm:$0xf0] }
 0x15f   : > { %v533_v10 = vpop.f32.mrf.mxu0 }
 0x160   : > { %v2057_v11 = vpack.c.bf16 %v533_v10, %v531_v7  ;;  %v1766_v7 = vor.u32 %v1967_v4, %v1763_v5  ;;  %v1854_v10 = vor.u32 %v1989_v8, %v1851_v9  ;;  %v1826_v4 = vor.u32 %v1984_v0, %v1825_v63 }
 0x162   : > { %2257 = vst [vmem:[#allocation3 + $0x20] sm:$0xff] %v2057_v11   ;;  %1029 = vmatpush.bf16.msra.mxu1 %v1994_v12  ;;  %2308 = vmatpush.bf16.msrb.mxu3 %v1994_v12  ;;  %v1785_v11 = vld [vmem:[#allocation6 + $0x60] sm:$0xf]  ;;  %v1974_v12 = vld [vmem:[#allocation6 + $0x64] sm:$0xf0] }
 0x166   : > { %1030 = vmatpush.bf16.msra.mxu1 %v1993_v13  ;;  %2309 = vmatpush.bf16.msrb.mxu3 %v1993_v13  ;;  %v1969_v13 = vld [vmem:[#allocation6 + $0x44] sm:$0xf] }
 0x167   : > { %v536_v14 = vpop.f32.mrf.mxu0 }
 0x169   : > { %1091 = vmatmul.bf16.vlgmr.msrb.gmra.mxu3 %v1834_v19  ;;  %1031 = vmatmul.bf16.vlgmr.msra.gmra.mxu1 %v1738_v22  ;;  %v2002_v37 = vld [vmem:[#allocation3 + $0x20] sm:$0xff]  ;;  %v1971_v22 = vld [vmem:[#allocation6 + $0x54] sm:$0xf] }
 0x16a   : > { %2310 = vmatpush.bf16.msra.mxu3 %v2008_v51  ;;  %v1747_v51 = vld [vmem:[#allocation6 + $0x18] sm:$0xf0] }
 0x16e   : > { %2311 = vmatpush.bf16.msra.mxu3 %v2007_v53  ;;  %v1750_v53 = vor.u32 %v1963_v50, %v1747_v51  ;;  %v1982_v50 = vld [vmem:[#allocation6 + $0xa4] sm:$0xf0] }
 0x16f   : > { %v538_v15 = vpop.f32.mrf.mxu0 }
 0x170   : > { %v2062_v18 = vpack.c.bf16 %v538_v15, %v536_v14  ;;  %v1771_v14 = vld [vmem:[#allocation6 + $0x48] sm:$0xf0]  ;;  %v1786_v15 = vor.u32 %v1974_v12, %v1785_v11  ;;  %v1981_v11 = vld [vmem:[#allocation6 + $0xa4] sm:$0xf] }
 0x171   : > { %v1774_v16 = vor.u32 %v1969_v13, %v1771_v14  ;;  %v1819_v12 = vld [vmem:[#allocation6 + $0xa8] sm:$0xf0] }
 0x172   : > { %2312 = vmatpush.bf16.msra.mxu3 %v2006_v54  ;;  %2258 = vst [vmem:[#allocation3 + $0x10] sm:$0xff] %v2062_v18   ;;  %v1985_v54 = vld [vmem:[#allocation6 + $0xc4] sm:$0xf]  ;;  %v1859_v18 = vld [vmem:[#allocation6 + $0xf8] sm:$0xf0] }
 0x173   : > { %v1838_v56 = vor.u32 %v1985_v54, %v1835_v55  ;;  %v1862_v19 = vor.u32 %v1991_v17, %v1859_v18  ;;  %v2740_v54 = vld [vmem:[%s249_s23] ss:$0 sm:$0xff] }
 0x176   : > { %2313 = vmatpush.bf16.msra.mxu3 %v2005_v57  ;;  %v1769_v57 = vld [vmem:[#allocation6 + $0x40] sm:$0xf] }
 0x177   : > { %v541_v23 = vpop.f32.mrf.mxu0  ;;  %v1770_v61 = vor.u32 %v1970_v58, %v1769_v57 }
 0x179   : > { %1096 = vmatmul.bf16.gmra.mxu3 %v1842_v26  ;;  %1036 = vmatmul.bf16.gmra.mxu1 %v1746_v31  ;;  %v2003_v35 = vld [vmem:[#allocation3 + $0x10] sm:$0xff]  ;;  %v1801_v26 = vld [vmem:[#allocation6 + $0x80] sm:$0xf] }
 0x17f   : > { %v543_v27 = vpop.f32.mrf.mxu0 }
 0x180   : > { %v2067_v28 = vpack.c.bf16 %v543_v27, %v541_v23  ;;  %v1779_v23 = vld [vmem:[#allocation6 + $0x58] sm:$0xf0]  ;;  %v1978_v27 = vld [vmem:[#allocation6 + $0x84] sm:$0xf0] }
 0x181   : > { %v1782_v25 = vor.u32 %v1971_v22, %v1779_v23  ;;  %v1802_v30 = vor.u32 %v1978_v27, %v1801_v26 }
 0x182   : > { %2259 = vst [vmem:[#allocation3 + $0x38] sm:$0xff] %v2067_v28   ;;  %v1973_v28 = vld [vmem:[#allocation6 + $0x64] sm:$0xf] }
 0x183   : > { %v1790_v33 = vor.u32 %v1973_v28, %v1787_v29  ;;  %v1983_v28 = vld [vmem:[#allocation6 + $0xb4] sm:$0xf]  ;;  %v1827_v29 = vld [vmem:[#allocation6 + $0xb8] sm:$0xf0] }
 0x189   : > { %v2004_v32 = vld [vmem:[#allocation3 + $0x38] sm:$0xff]  ;;  %1101 = vmatmul.bf16.gmra.mxu3 %v1850_v36  ;;  %1041 = vmatmul.bf16.gmra.mxu1 %v1754_v42  ;;  %v1975_v36 = vld [vmem:[#allocation6 + $0x74] sm:$0xf] }
 0x18a   : > { %1116 = vmatpush.bf16.msra.mxu2 %v2004_v32  ;;  %2314 = vmatpush.bf16.msra.mxu3 %v2004_v32 }
 0x18e   : > { %1117 = vmatpush.bf16.msra.mxu2 %v2003_v35  ;;  %2315 = vmatpush.bf16.msra.mxu3 %v2003_v35 }
 0x192   : > { %1118 = vmatpush.bf16.msra.mxu2 %v2002_v37  ;;  %2316 = vmatpush.bf16.msra.mxu3 %v2002_v37  ;;  %v1795_v37 = vld [vmem:[#allocation6 + $0x78] sm:$0xf0] }
 0x193   : > { %v1798_v42 = vor.u32 %v1975_v36, %v1795_v37 }
 0x196   : > { %1119 = vmatpush.bf16.msra.mxu2 %v2001_v43  ;;  %2317 = vmatpush.bf16.msra.mxu3 %v2001_v43  ;;  %v1810_v43 = vor.u32 %v1980_v41, %v1809_v40 }
 0x199   : > { %1120 = vmatmul.bf16.vlgmr.msra.gmra.mxu2 %v1742_v44  ;;  %1106 = vmatmul.bf16.gmra.mxu3 %v1858_v47  ;;  %v1803_v47 = vld [vmem:[#allocation6 + $0x88] sm:$0xf0] }
 0x19a   : > { %1046 = vmatmul.bf16.gmra.mxu1 %v1762_v52  ;;  %v1806_v51 = vor.u32 %v1977_v46, %v1803_v47  ;;  %v1818_v52 = vor.u32 %v1982_v50, %v1817_v49 }
 0x1a9   : > { %1125 = vmatmul.bf16.gmra.mxu2 %v1750_v53  ;;  %1180 = vmatmul.bf16.vlgmr.msra.gmra.mxu3 %v1838_v56 }
 0x1aa   : > { %1051 = vmatmul.bf16.gmra.mxu1 %v1770_v61  ;;  %v1811_v61 = vld [vmem:[#allocation6 + $0x98] sm:$0xf0] }
 0x1ab   : > { %v1814_v2 = vor.u32 %v1979_v60, %v1811_v61 }
 0x1b9   : > { %1130 = vmatmul.bf16.gmra.mxu2 %v1758_v62  ;;  %1185 = vmatmul.bf16.gmra.mxu3 %v1846_v1 }
 0x1ba   : > { %1056 = vmatmul.bf16.gmra.mxu1 %v1778_v6 }
 0x1c9   : > { %1135 = vmatmul.bf16.gmra.mxu2 %v1766_v7  ;;  %1190 = vmatmul.bf16.gmra.mxu3 %v1854_v10 }
 0x1ca   : > { %1061 = vmatmul.bf16.gmra.mxu1 %v1786_v15 }
 0x1d9   : > { %1140 = vmatmul.bf16.gmra.mxu2 %v1774_v16  ;;  %1195 = vmatmul.bf16.gmra.mxu3 %v1862_v19  ;;  %v1822_v16 = vor.u32 %v1981_v11, %v1819_v12 }
 0x1da   : > { %1066 = vmatmul.bf16.gmra.mxu1 %v1794_v24 }
 0x1e6   : > { %v1032_v31 = vpop.f32.mrf.mxu1 }
 0x1e9   : > { %1145 = vmatmul.bf16.gmra.mxu2 %v1782_v25 }
 0x1ea   : > { %1071 = vmatmul.bf16.gmra.mxu1 %v1802_v30 }
 0x1ec   : > { %v1092_v32 = vpop.f32.mrf.mxu3 }
 0x1ee   : > { %v1034_v34 = vpop.f32.mrf.mxu1 }
 0x1f4   : > { %v1094_v35 = vpop.f32.mrf.mxu3 }
 0x1f6   : > { %v1037_v38 = vpop.f32.mrf.mxu1 }
 0x1f9   : > { %1150 = vmatmul.bf16.gmra.mxu2 %v1790_v33 }
 0x1fa   : > { %1076 = vmatmul.bf16.gmra.mxu1 %v1810_v43 }
 0x1fc   : > { %v2729_v39 = vpop.f32.mrf.mxu3 }
 0x1fe   : > { %v1039_v44 = vpop.f32.mrf.mxu1 }
 0x204   : > { %v2731_v45 = vpop.f32.mrf.mxu3 }
 0x206   : > { %v1042_v53 = vpop.f32.mrf.mxu1 }
 0x209   : > { %1155 = vmatmul.bf16.gmra.mxu2 %v1798_v42 }
 0x20a   : > { %1081 = vmatmul.bf16.gmra.mxu1 %v1818_v52 }
 0x20c   : > { %v2733_v48 = vpop.f32.mrf.mxu3 }
 0x20e   : > { %v1044_v59 = vpop.f32.mrf.mxu1 }
 0x214   : > { %v2742_v57 = vpop.f32.mrf.mxu3 }
 0x217   : > { %v1047_v6 = vpop.f32.mrf.mxu1 }
 0x219   : > { %1160 = vmatmul.bf16.gmra.mxu2 %v1806_v51 }
 0x21a   : > { %1086 = vmatmul.bf16.gmra.mxu1 %v1826_v4 }
 0x21c   : > { %v1121_v55 = vpop.f32.mrf.mxu2  ;;  %v2747_v3 = vpop.f32.mrf.mxu3 }
 0x21d   : > { %v1122_v56 = vadd.f32 %v1121_v55, %v1032_v31 }
 0x21f   : > { %v2745_v58 = vadd.f32 %v2740_v54, %v1122_v56  ;;  %v1049_v14 = vpop.f32.mrf.mxu1 }
 0x224   : > { %v1123_v62 = vpop.f32.mrf.mxu2  ;;  %v1109_v9 = vpop.f32.mrf.mxu3 }
 0x225   : > { %v1124_v1 = vadd.f32 %v1123_v62, %v1034_v34 }
 0x227   : > { %v2750_v5 = vadd.f32 %v2740_v54, %v1124_v1  ;;  %v1052_v24 = vpop.f32.mrf.mxu1 }
 0x229   : > { %1165 = vmatmul.bf16.gmra.mxu2 %v1814_v2 }
 0x22c   : > { %v1126_v7 = vpop.f32.mrf.mxu2  ;;  %v1181_v17 = vpop.f32.mrf.mxu3 }
 0x22d   : > { %v1127_v8 = vadd.f32 %v1126_v7, %v1037_v38  ;;  %v1182_v19 = vadd.f32 %v1181_v17, %v1092_v32  ;;  %v1830_v32 = vor.u32 %v1983_v28, %v1827_v29 }
 0x22f   : > { %v2753_v10 = vadd.f32 %v2740_v54, %v1127_v8  ;;  %v2759_v20 = vadd.f32 %v2740_v54, %v1182_v19  ;;  %v1054_v37 = vpop.f32.mrf.mxu1 }
 0x234   : > { %v1128_v13 = vpop.f32.mrf.mxu2  ;;  %v1183_v23 = vpop.f32.mrf.mxu3 }
 0x235   : > { %v1129_v15 = vadd.f32 %v1128_v13, %v1039_v44  ;;  %v1184_v25 = vadd.f32 %v1183_v23, %v1094_v35 }
 0x237   : > { %v2756_v18 = vadd.f32 %v2740_v54, %v1129_v15  ;;  %v2765_v27 = vadd.f32 %v2740_v54, %v1184_v25  ;;  %v1057_v46 = vpop.f32.mrf.mxu1 }
 0x239   : > { %1170 = vmatmul.bf16.gmra.mxu2 %v1822_v16 }
 0x23c   : > { %v1131_v21 = vpop.f32.mrf.mxu2  ;;  %v1186_v33 = vpop.f32.mrf.mxu3 }
 0x23d   : > { %v1132_v22 = vadd.f32 %v1131_v21, %v1042_v53  ;;  %v1187_v36 = vadd.f32 %v1186_v33, %v2729_v39 }
 0x23f   : > { %v2762_v26 = vadd.f32 %v2740_v54, %v1132_v22  ;;  %v2772_v35 = vadd.f32 %v2740_v54, %v1187_v36 }
 0x244   : > { %v1133_v30 = vpop.f32.mrf.mxu2  ;;  %v1188_v41 = vpop.f32.mrf.mxu3 }
 0x245   : > { %v1134_v31 = vadd.f32 %v1133_v30, %v1044_v59  ;;  %v1189_v42 = vadd.f32 %v1188_v41, %v2731_v45  ;;  %v1059_v45 = vpop.f32.mrf.mxu1 }
 0x247   : > { %v2768_v34 = vadd.f32 %v2740_v54, %v1134_v31  ;;  %v2779_v44 = vadd.f32 %v2740_v54, %v1189_v42 }
 0x249   : > { %1175 = vmatmul.bf16.gmra.mxu2 %v1830_v32 }
 0x24c   : > { %v1136_v38 = vpop.f32.mrf.mxu2  ;;  %v1191_v39 = vpop.f32.mrf.mxu3 }
 0x24d   : > { %v1137_v40 = vadd.f32 %v1136_v38, %v1047_v6  ;;  %v1192_v51 = vadd.f32 %v1191_v39, %v2733_v48  ;;  %v1062_v1 = vpop.f32.mrf.mxu1 }
 0x24f   : > { %v2776_v43 = vadd.f32 %v2740_v54, %v1137_v40  ;;  %v2786_v52 = vadd.f32 %v2740_v54, %v1192_v51 }
 0x254   : > { %v1138_v47 = vpop.f32.mrf.mxu2  ;;  %v1193_v56 = vpop.f32.mrf.mxu3 }
 0x255   : > { %v1139_v49 = vadd.f32 %v1138_v47, %v1049_v14  ;;  %v1194_v59 = vadd.f32 %v1193_v56, %v2742_v57  ;;  %v1064_v12 = vpop.f32.mrf.mxu1 }
 0x257   : > { %v2782_v50 = vadd.f32 %v2740_v54, %v1139_v49  ;;  %v2793_v61 = vadd.f32 %v2740_v54, %v1194_v59 }
 0x25c   : > { %v1141_v53 = vpop.f32.mrf.mxu2  ;;  %v1196_v0 = vpop.f32.mrf.mxu3 }
 0x25d   : > { %v1142_v55 = vadd.f32 %v1141_v53, %v1052_v24  ;;  %v1197_v2 = vadd.f32 %v1196_v0, %v2747_v3  ;;  %v1067_v3 = vpop.f32.mrf.mxu1 }
 0x25f   : > { %v2790_v60 = vadd.f32 %v2740_v54, %v1142_v55  ;;  %v2800_v4 = vadd.f32 %v2740_v54, %v1197_v2 }
 0x264   : > { %v1143_v62 = vpop.f32.mrf.mxu2  ;;  %v1198_v7 = vpop.f32.mrf.mxu3 }
 0x265   : > { %v1144_v63 = vadd.f32 %v1143_v62, %v1054_v37  ;;  %v1199_v8 = vadd.f32 %v1198_v7, %v1109_v9  ;;  %v1069_v9 = vpop.f32.mrf.mxu1 }
 0x267   : > { %v2796_v48 = vadd.f32 %v2740_v54, %v1144_v63  ;;  %v2806_v13 = vadd.f32 %v2740_v54, %v1199_v8 }
 0x26c   : > { %v1146_v6 = vpop.f32.mrf.mxu2 }
 0x26d   : > { %v1147_v57 = vadd.f32 %v1146_v6, %v1057_v46  ;;  %v1072_v29 = vpop.f32.mrf.mxu1 }
 0x26f   : > { %v2803_v11 = vadd.f32 %v2740_v54, %v1147_v57 }
 0x274   : > { %v1148_v14 = vpop.f32.mrf.mxu2 }
 0x275   : > { %v1149_v15 = vadd.f32 %v1148_v14, %v1059_v45  ;;  %v1074_v36 = vpop.f32.mrf.mxu1 }
 0x277   : > { %v2809_v16 = vadd.f32 %v2740_v54, %v1149_v15 }
 0x27c   : > { %v1151_v17 = vpop.f32.mrf.mxu2 }
 0x27d   : > { %v1152_v19 = vadd.f32 %v1151_v17, %v1062_v1  ;;  %v1077_v41 = vpop.f32.mrf.mxu1 }
 0x27f   : > { %v2812_v21 = vadd.f32 %v2740_v54, %v1152_v19 }
 0x284   : > { %v1153_v22 = vpop.f32.mrf.mxu2 }
 0x285   : > { %v1154_v23 = vadd.f32 %v1153_v22, %v1064_v12  ;;  %v1079_v49 = vpop.f32.mrf.mxu1 }
 0x287   : > { %v2815_v24 = vadd.f32 %v2740_v54, %v1154_v23 }
 0x28c   : > { %v1156_v25 = vpop.f32.mrf.mxu2 }
 0x28d   : > { %v1157_v28 = vadd.f32 %v1156_v25, %v1067_v3  ;;  %v1082_v56 = vpop.f32.mrf.mxu1 }
 0x28f   : > { %v2818_v30 = vadd.f32 %v2740_v54, %v1157_v28 }
 0x294   : > { %v1158_v31 = vpop.f32.mrf.mxu2 }
 0x295   : > { %v1159_v32 = vadd.f32 %v1158_v31, %v1069_v9  ;;  %v1084_v1 = vpop.f32.mrf.mxu1 }
 0x297   : > { %v2821_v33 = vadd.f32 %v2740_v54, %v1159_v32 }
 0x29c   : > { %v1161_v37 = vpop.f32.mrf.mxu2 }
 0x29d   : > { %v1162_v38 = vadd.f32 %v1161_v37, %v1072_v29  ;;  %v1087_v7 = vpop.f32.mrf.mxu1 }
 0x29f   : > { %v2824_v40 = vadd.f32 %v2740_v54, %v1162_v38 }
 0x2a4   : > { %v1163_v42 = vpop.f32.mrf.mxu2 }
 0x2a5   : > { %v1164_v46 = vadd.f32 %v1163_v42, %v1074_v36  ;;  %v1089_v15 = vpop.f32.mrf.mxu1 }
 0x2a7   : > { %v2827_v47 = vadd.f32 %v2740_v54, %v1164_v46 }
 0x2ac   : > { %v1166_v39 = vpop.f32.mrf.mxu2 }
 0x2ad   : > { %v1167_v51 = vadd.f32 %v1166_v39, %v1077_v41 }
 0x2af   : > { %v2830_v53 = vadd.f32 %v2740_v54, %v1167_v51 }
 0x2b4   : > { %v1168_v45 = vpop.f32.mrf.mxu2 }
 0x2b5   : > { %v1169_v55 = vadd.f32 %v1168_v45, %v1079_v49 }
 0x2b7   : > { %v2833_v59 = vadd.f32 %v2740_v54, %v1169_v55 }
 0x2bc   : > { %v1171_v62 = vpop.f32.mrf.mxu2 }
 0x2bd   : > { %v1172_v63 = vadd.f32 %v1171_v62, %v1082_v56 }
 0x2bf   : > { %v2836_v0 = vadd.f32 %v2740_v54, %v1172_v63 }
 0x2c4   : > { %v1173_v2 = vpop.f32.mrf.mxu2 }
 0x2c5   : > { %v1174_v6 = vadd.f32 %v1173_v2, %v1084_v1 }
 0x2c7   : > { %v2839_v57 = vadd.f32 %v2740_v54, %v1174_v6 }
 0x2cc   : > { %v1176_v8 = vpop.f32.mrf.mxu2 }
 0x2cd   : > { %v1177_v12 = vadd.f32 %v1176_v8, %v1087_v7 }
 0x2cf   : > { %v2842_v14 = vadd.f32 %v2740_v54, %v1177_v12 }
 0x2d3   : > { %1339 = sbr.rel (%p1927_p1) target bundleno = 746 (0x2ea), region = 64 }
 0x2d4   : > { %v1178_v3 = vpop.f32.mrf.mxu2 }
 0x2d5   : > { %v1179_v17 = vadd.f32 %v1178_v3, %v1089_v15 }
 0x2d7   : > { %v2845_v19 = vadd.f32 %v2740_v54, %v1179_v17 }
 0x2d8   : > { %v2092_v22 = vpack.c.bf16 %v2750_v5, %v2745_v58  ;;  %v2097_v9 = vpack.c.bf16 %v2756_v18, %v2753_v10  ;;  %v2102_v23 = vpack.c.bf16 %v2768_v34, %v2762_v26  ;;  %v2107_v25 = vpack.c.bf16 %v2782_v50, %v2776_v43 }
 0x2d9   : > { %v2112_v54 = vpack.c.bf16 %v2796_v48, %v2790_v60  ;;  %v2117_v28 = vpack.c.bf16 %v2809_v16, %v2803_v11  ;;  %v2122_v29 = vpack.c.bf16 %v2815_v24, %v2812_v21  ;;  %v2127_v31 = vpack.c.bf16 %v2821_v33, %v2818_v30 }
 0x2da   : > { %2093 = vst [vmem:[#allocation11] sm:$0xff] %v2092_v22   ;;  %v2132_v32 = vpack.c.bf16 %v2827_v47, %v2824_v40  ;;  %v2137_v36 = vpack.c.bf16 %v2833_v59, %v2830_v53  ;;  %v2142_v37 = vpack.c.bf16 %v2839_v57, %v2836_v0  ;;  %v2147_v38 = vpack.c.bf16 %v2845_v19, %v2842_v14 }
 0x2db   : > { %2264 = vst [vmem:[#allocation11 + $0x8] sm:$0xff] %v2097_v9   ;;  %v2152_v41 = vpack.c.bf16 %v2765_v27, %v2759_v20  ;;  %v2157_v42 = vpack.c.bf16 %v2779_v44, %v2772_v35  ;;  %v2162_v46 = vpack.c.bf16 %v2793_v61, %v2786_v52  ;;  %v2167_v49 = vpack.c.bf16 %v2806_v13, %v2800_v4 }
 0x2dc   : > { %2265 = vst [vmem:[#allocation11 + $0x10] sm:$0xff] %v2102_v23  }
 0x2dd   : > { %2266 = vst [vmem:[#allocation11 + $0x18] sm:$0xff] %v2107_v25  }
 0x2de   : > { %2267 = vst [vmem:[#allocation11 + $0x20] sm:$0xff] %v2112_v54  }
 0x2df   : > { %2268 = vst [vmem:[#allocation11 + $0x28] sm:$0xff] %v2117_v28  }
 0x2e0   : > { %2269 = vst [vmem:[#allocation11 + $0x30] sm:$0xff] %v2122_v29  }
 0x2e1   : > { %2270 = vst [vmem:[#allocation11 + $0x38] sm:$0xff] %v2127_v31  }
 0x2e2   : > { %2271 = vst [vmem:[#allocation11 + $0x40] sm:$0xff] %v2132_v32  }
 0x2e3   : > { %2272 = vst [vmem:[#allocation11 + $0x48] sm:$0xff] %v2137_v36  }
 0x2e4   : > { %2273 = vst [vmem:[#allocation11 + $0x50] sm:$0xff] %v2142_v37  }
 0x2e5   : > { %2274 = vst [vmem:[#allocation11 + $0x58] sm:$0xff] %v2147_v38  }
 0x2e6   : > { %2275 = vst [vmem:[#allocation11 + $0x60] sm:$0xff] %v2152_v41  }
 0x2e7   : > { %2276 = vst [vmem:[#allocation11 + $0x68] sm:$0xff] %v2157_v42  }
 0x2e8   : > { %2277 = vst [vmem:[#allocation11 + $0x70] sm:$0xff] %v2162_v46  }
 0x2e9   : > { %2278 = vst [vmem:[#allocation11 + $0x78] sm:$0xff] %v2167_v49  }
 0x2ea PF: > { %p1928_p4 = scmp.ge.s32.totalorder %s2571_s18, 1 }
 0x2ec   : > { %1407 = sbr.rel (%p1928_p4) target bundleno = 773 (0x305), region = 68 }
 0x2f1   : > { %v1409_v39 = vmax.f32 %v2745_v58, 0.0  ;;  %v1410_v51 = vmax.f32 %v2750_v5, 0.0  ;;  %v1411_v45 = vmax.f32 %v2753_v10, 0.0  ;;  %v1412_v55 = vmax.f32 %v2756_v18, 0.0 }
 0x2f2   : > { %v1413_v56 = vmax.f32 %v2762_v26, 0.0  ;;  %v1414_v62 = vmax.f32 %v2768_v34, 0.0  ;;  %v1415_v63 = vmax.f32 %v2776_v43, 0.0  ;;  %v1416_v1 = vmax.f32 %v2782_v50, 0.0 }
 0x2f3   : > { %v2172_v2 = vpack.c.bf16 %v1410_v51, %v1409_v39  ;;  %v2177_v6 = vpack.c.bf16 %v1412_v55, %v1411_v45  ;;  %v1417_v7 = vmax.f32 %v2790_v60, 0.0  ;;  %v1418_v58 = vmax.f32 %v2796_v48, 0.0 }
 0x2f4   : > { %v2182_v8 = vpack.c.bf16 %v1414_v62, %v1413_v56  ;;  %v2187_v5 = vpack.c.bf16 %v1416_v1, %v1415_v63  ;;  %v1419_v10 = vmax.f32 %v2803_v11, 0.0  ;;  %v1420_v18 = vmax.f32 %v2809_v16, 0.0 }
 0x2f5   : > { %2173 = vst [vmem:[#allocation2] sm:$0xff] %v2172_v2   ;;  %v2192_v26 = vpack.c.bf16 %v1418_v58, %v1417_v7  ;;  %v1421_v34 = vmax.f32 %v2812_v21, 0.0  ;;  %v1422_v43 = vmax.f32 %v2815_v24, 0.0  ;;  %v1423_v50 = vmax.f32 %v2818_v30, 0.0 }
 0x2f6   : > { %2279 = vst [vmem:[#allocation2 + $0x8] sm:$0xff] %v2177_v6   ;;  %v2197_v12 = vpack.c.bf16 %v1420_v18, %v1419_v10  ;;  %v1424_v60 = vmax.f32 %v2821_v33, 0.0  ;;  %v1425_v48 = vmax.f32 %v2824_v40, 0.0  ;;  %v1426_v15 = vmax.f32 %v2827_v47, 0.0 }
 0x2f7   : > { %2280 = vst [vmem:[#allocation2 + $0x10] sm:$0xff] %v2182_v8   ;;  %v2202_v11 = vpack.c.bf16 %v1422_v43, %v1421_v34  ;;  %v1427_v16 = vmax.f32 %v2830_v53, 0.0  ;;  %v1428_v3 = vmax.f32 %v2833_v59, 0.0  ;;  %v1429_v21 = vmax.f32 %v2836_v0, 0.0 }
 0x2f8   : > { %2281 = vst [vmem:[#allocation2 + $0x18] sm:$0xff] %v2187_v5   ;;  %v2207_v24 = vpack.c.bf16 %v1424_v60, %v1423_v50  ;;  %v1430_v30 = vmax.f32 %v2839_v57, 0.0  ;;  %v1431_v17 = vmax.f32 %v2842_v14, 0.0  ;;  %v2212_v33 = vpack.c.bf16 %v1426_v15, %v1425_v48 }
 0x2f9   : > { %2282 = vst [vmem:[#allocation2 + $0x20] sm:$0xff] %v2192_v26   ;;  %v1432_v40 = vmax.f32 %v2845_v19, 0.0  ;;  %v1433_v47 = vmax.f32 %v2759_v20, 0.0  ;;  %v1434_v22 = vmax.f32 %v2765_v27, 0.0  ;;  %v2217_v53 = vpack.c.bf16 %v1428_v3, %v1427_v16 }
 0x2fa   : > { %2283 = vst [vmem:[#allocation2 + $0x28] sm:$0xff] %v2197_v12   ;;  %v1435_v59 = vmax.f32 %v2772_v35, 0.0  ;;  %v1436_v0 = vmax.f32 %v2779_v44, 0.0  ;;  %v2222_v9 = vpack.c.bf16 %v1430_v30, %v1429_v21  ;;  %v1437_v57 = vmax.f32 %v2786_v52, 0.0 }
 0x2fb   : > { %2284 = vst [vmem:[#allocation2 + $0x30] sm:$0xff] %v2202_v11   ;;  %v1438_v14 = vmax.f32 %v2793_v61, 0.0  ;;  %v2227_v23 = vpack.c.bf16 %v1432_v40, %v1431_v17  ;;  %v1439_v19 = vmax.f32 %v2800_v4, 0.0  ;;  %v1440_v20 = vmax.f32 %v2806_v13, 0.0 }
 0x2fc   : > { %2285 = vst [vmem:[#allocation2 + $0x38] sm:$0xff] %v2207_v24   ;;  %v2232_v27 = vpack.c.bf16 %v1434_v22, %v1433_v47  ;;  %v2237_v25 = vpack.c.bf16 %v1436_v0, %v1435_v59 }
 0x2fd   : > { %2286 = vst [vmem:[#allocation2 + $0x40] sm:$0xff] %v2212_v33   ;;  %v2242_v35 = vpack.c.bf16 %v1438_v14, %v1437_v57  ;;  %v2247_v44 = vpack.c.bf16 %v1440_v20, %v1439_v19 }
 0x2fe   : > { %2287 = vst [vmem:[#allocation2 + $0x48] sm:$0xff] %v2217_v53  }
 0x2ff   : > { %2288 = vst [vmem:[#allocation2 + $0x50] sm:$0xff] %v2222_v9  }
 0x300   : > { %2289 = vst [vmem:[#allocation2 + $0x58] sm:$0xff] %v2227_v23  }
 0x301   : > { %2290 = vst [vmem:[#allocation2 + $0x60] sm:$0xff] %v2232_v27  }
 0x302   : > { %2291 = vst [vmem:[#allocation2 + $0x68] sm:$0xff] %v2237_v25  }
 0x303   : > { %2292 = vst [vmem:[#allocation2 + $0x70] sm:$0xff] %v2242_v35  }
 0x304   : > { %2293 = vst [vmem:[#allocation2 + $0x78] sm:$0xff] %v2247_v44  }
 0x305 PF: > { %p2341_p5 = scmp.eq.s32.totalorder %s1627_s21, 1  ;;  %s1519_s30 = sshll.u32 %s2940_s4, 4  ;;  %s1520_s30 = int_to_ptr.hbm [resolvable:$true] %s1519_s30 }
 0x306   : > { %s2587_s5 = smov [#allocation11]   ;;  %s2588_s9 = smov 64  }
 0x307   : > { %s1517_s7 = sshll.u32 %s2587_s5, 4  ;;  %s2589_s8 = smov 4   ;;  %s1518_s7 = int_to_ptr.vmem [resolvable:$true] %s1517_s7 }
 0x308   : > { %2327 = dma.vmem_to_hbm [thread:$0]  (%p2341_p5), %s1518_s7, 2048, %s1520_s30, [#allocation8], %s2588_s9, %s2588_s9, %s2589_s8  }
 0x309   : > { %2554 = dma.done.wait (%p2341_p5), [#allocation8], 2048  }
 0x30a   : > { %2556 = vsyncadd (%p2341_p5), [#allocation8], 4294965248 }
 0x30b PF: > { %s19_s20 = sadd.s32 1, %s2579_s20   ;;  %s2945_s15 = smov %s2563_s16 }
 0x30c   : > { %p16_p6 = scmp.ge.s32.totalorder %s19_s20, 4   ;;  %s2946_s16 = smov %s2567_s17 }
 0x30d   : > { %s2947_s17 = smov %s2687_s13  ;;  %s2948_s18 = smov %s2575_s19 }
 0x30e   : > { %s2949_s19 = smov %s2951_s6  ;;  %18 = sbr.rel (!%p16_p6) target bundleno = 6 (0x6), region = 111 }
 0x313   :  { %1536 = vsyncpa [#allocation7], 1 }
 0x314   :  { %1538 = vsyncpa [#allocation7 + $0x1], 1 }
 0x315   :  { %1539 = vsyncpa [#allocation10], 1 }
 0x316   :  { %1541 = vsyncpa [#allocation10 + $0x1], 1 }
 0x317   :  { %1542 = vsyncpa [#allocation8], 1 }
 0x318   :  { %1544 = vsyncpa [#allocation8 + $0x1], 1 }
 0x319   :  { %1545 = vsyncmov [#allocation5] }
 0x31c   :  { %s1546_s21 = vpop.sfrf %1545 }
 0x31d   :  { %p1933_p7 = scmp.ne.s32.totalorder %s1546_s21, 0 }
 0x31f   :  { %1550 = shalt.err (%p1933_p7)  }

</bundles_post_ra>
